<compile_context>
chip_gen: v6e
topology: v6e:2x2x1
jax: 0.10.0
libtpu: 0.0.40
codegen_flags: <defaults>
</compile_context>

<pallas_src>
import jax
import jax.numpy as jnp
from jax.experimental import pallas as pl
from jax.experimental.pallas import tpu as pltpu


def grn_kernel(x_ref, gamma_ref, beta_ref, o_ref):
    x = x_ref[...]                                     # (NB, H, W, C)
    xf = x.astype(jnp.float32)

    # L2 norm over spatial dims, accumulated in f32 -> (NB, 1, 1, C)
    ssq = jnp.sum(xf * xf, axis=(1, 2), keepdims=True)
    gx = jnp.sqrt(ssq)

    # Normalize by the channel mean of Gx (tiny (NB,1,1,1) divide; exact).
    mean_gx = jnp.mean(gx, axis=-1, keepdims=True)     # (NB, 1, 1, 1)
    nx = gx / (mean_gx + 1e-6)                         # (NB, 1, 1, C)

    gamma = gamma_ref[...].astype(jnp.float32)[None, None, :, :]   # (1,1,1,C)
    beta = beta_ref[...].astype(jnp.float32)[None, None, :, :]     # (1,1,1,C)

    # out = gamma*(x*nx) + beta + x  ==  x * (1 + gamma*nx) + beta
    scale = 1.0 + gamma * nx                           # (NB, 1, 1, C), hoisted

    if x.dtype == jnp.float32:
        out = xf * scale + beta
    else:
        # Native-dtype epilogue for bf16 etc. (f32 only for the reduction).
        out = x * scale.astype(x.dtype) + beta.astype(x.dtype)

    o_ref[...] = out.astype(o_ref.dtype)


def _choose_batch_block(N, per_batch_bytes, target_bytes=2 << 20):
    """Pick NB (batches per grid step): big blocks, but keep >=2 steps if possible."""
    nb = max(1, min(N, target_bytes // max(per_batch_bytes, 1)))
    if N >= 2:
        nb = min(nb, N // 2)   # leave >= 2 parallel grid steps (v7x dual TC)
    nb = max(nb, 1)
    while N % nb:
        nb -= 1
    return nb


def grn(x, gamma, beta):
    """x: (N, H, W, C); gamma, beta: (1, 1, 1, C). Returns array like x."""
    N, H, W, C = x.shape
    gamma2 = jnp.reshape(gamma, (1, C))
    beta2 = jnp.reshape(beta, (1, C))

    per_batch_bytes = H * W * C * x.dtype.itemsize
    nb = _choose_batch_block(N, per_batch_bytes)
    grid = (N // nb,)

    # VMEM budget: double-buffered input + output blocks plus f32 temporaries.
    in_block_bytes = nb * per_batch_bytes
    f32_block_bytes = nb * H * W * C * 4
    need = 2 * (2 * in_block_bytes) + 2 * f32_block_bytes + (2 << 20)
    vmem_limit = int(min(max(need, 16 << 20), 48 << 20))

    return pl.pallas_call(
        grn_kernel,
        out_shape=jax.ShapeDtypeStruct((N, H, W, C), x.dtype),
        grid_spec=pltpu.PrefetchScalarGridSpec(
            num_scalar_prefetch=0,
            grid=grid,
            in_specs=[
                pl.BlockSpec((nb, H, W, C), lambda n: (n, 0, 0, 0)),
                pl.BlockSpec((1, C), lambda n: (0, 0)),
                pl.BlockSpec((1, C), lambda n: (0, 0)),
            ],
            out_specs=pl.BlockSpec((nb, H, W, C), lambda n: (n, 0, 0, 0)),
        ),
        compiler_params=pltpu.CompilerParams(
            dimension_semantics=("parallel",),
            vmem_limit_bytes=vmem_limit,
        ),
    )(x, gamma2, beta2)


def grn_ref(x, gamma, beta):
    """Pure-JAX reference mirroring the PyTorch forward."""
    xf = x.astype(jnp.float32)
    gx = jnp.sqrt(jnp.sum(xf * xf, axis=(1, 2), keepdims=True))
    nx = gx / (jnp.mean(gx, axis=-1, keepdims=True) + 1e-6)
    return (gamma * (xf * nx) + beta + xf).astype(x.dtype)


if __name__ == "__main__":
    key = jax.random.PRNGKey(0)
    kx, kg, kb = jax.random.split(key, 3)

    N, H, W, C = 2, 16, 16, 32
    x = jax.random.normal(kx, (N, H, W, C), dtype=jnp.float32)

    # Module __init__ uses zeros(1,1,1,dim); use small deterministic random
    # values instead so the normalization path is actually exercised.
    gamma = 0.1 * jax.random.normal(kg, (1, 1, 1, C), dtype=jnp.float32)
    beta = 0.1 * jax.random.normal(kb, (1, 1, 1, C), dtype=jnp.float32)

    out = grn(x, gamma, beta)
    out = jax.block_until_ready(out)

    ref = grn_ref(x, gamma, beta)
    assert out.shape == (N, H, W, C)
    assert jnp.allclose(out, ref, atol=1e-5, rtol=1e-5), "mismatch vs reference"

    print("KERNEL_OK")
</pallas_src>

<mosaic_0001>
module attributes {stable_mosaic.version = 11 : i64} {
  func.func @grn_kernel(%arg0: i32, %arg1: memref<1x16x16x32xf32, #tpu.memory_space<vmem>>, %arg2: memref<1x32xf32, #tpu.memory_space<vmem>>, %arg3: memref<1x32xf32, #tpu.memory_space<vmem>>, %arg4: memref<1x16x16x32xf32, #tpu.memory_space<vmem>>) attributes {dimension_semantics = [#tpu.dimension_semantics<parallel>], iteration_bounds = array<i64: 2>, scalar_prefetch = 0 : i64, scratch_operands = 0 : i64, tpu.core_type = #tpu.core_type<tc>, window_params = [{transform_indices = @transform_0, window_bounds = array<i64: 1, 16, 16, 32>}, {pipeline_mode = #tpu.pipeline_mode<synchronous>, transform_indices = @transform_1, window_bounds = array<i64: 1, 32>}, {pipeline_mode = #tpu.pipeline_mode<synchronous>, transform_indices = @transform_2, window_bounds = array<i64: 1, 32>}, {transform_indices = @transform_3, window_bounds = array<i64: 1, 16, 16, 32>}]} {
    %c0 = arith.constant 0 : index
    %c0_0 = arith.constant 0 : index
    %c0_1 = arith.constant 0 : index
    %c0_2 = arith.constant 0 : index
    %0 = vector.load %arg1[%c0, %c0_0, %c0_1, %c0_2] : memref<1x16x16x32xf32, #tpu.memory_space<vmem>>, vector<1x16x16x32xf32>
    %1 = arith.mulf %0, %0 : vector<1x16x16x32xf32>
    %cst = arith.constant dense<0.000000e+00> : vector<1x32xf32>
    %2 = vector.multi_reduction <add>, %1, %cst [1, 2] : vector<1x16x16x32xf32> to vector<1x32xf32>
    %3 = vector.shape_cast %2 : vector<1x32xf32> to vector<1x1x1x32xf32>
    %4 = math.sqrt %3 : vector<1x1x1x32xf32>
    %cst_3 = arith.constant dense<0.000000e+00> : vector<1x1x1xf32>
    %5 = vector.multi_reduction <add>, %4, %cst_3 [3] : vector<1x1x1x32xf32> to vector<1x1x1xf32>
    %6 = vector.shape_cast %5 : vector<1x1x1xf32> to vector<1x1x1x1xf32>
    %cst_4 = arith.constant 3.200000e+01 : f32
    %7 = vector.broadcast %cst_4 : f32 to vector<1x1x1x1xf32>
    %8 = arith.divf %6, %7 : vector<1x1x1x1xf32>
    %cst_5 = arith.constant 9.99999997E-7 : f32
    %9 = vector.broadcast %cst_5 : f32 to vector<1x1x1x1xf32>
    %10 = arith.addf %8, %9 : vector<1x1x1x1xf32>
    %11 = vector.broadcast %10 : vector<1x1x1x1xf32> to vector<1x1x1x32xf32>
    %12 = arith.divf %4, %11 : vector<1x1x1x32xf32>
    %c0_6 = arith.constant 0 : index
    %c0_7 = arith.constant 0 : index
    %13 = vector.load %arg2[%c0_6, %c0_7] : memref<1x32xf32, #tpu.memory_space<vmem>>, vector<1x32xf32>
    %14 = vector.shape_cast %13 : vector<1x32xf32> to vector<1x1x1x32xf32>
    %c0_8 = arith.constant 0 : index
    %c0_9 = arith.constant 0 : index
    %15 = vector.load %arg3[%c0_8, %c0_9] : memref<1x32xf32, #tpu.memory_space<vmem>>, vector<1x32xf32>
    %16 = vector.shape_cast %15 : vector<1x32xf32> to vector<1x1x1x32xf32>
    %17 = arith.mulf %14, %12 : vector<1x1x1x32xf32>
    %cst_10 = arith.constant 1.000000e+00 : f32
    %18 = vector.broadcast %cst_10 : f32 to vector<1x1x1x32xf32>
    %19 = arith.addf %18, %17 : vector<1x1x1x32xf32>
    %20 = vector.broadcast %19 : vector<1x1x1x32xf32> to vector<1x16x16x32xf32>
    %21 = arith.mulf %0, %20 : vector<1x16x16x32xf32>
    %22 = vector.broadcast %16 : vector<1x1x1x32xf32> to vector<1x16x16x32xf32>
    %23 = arith.addf %21, %22 : vector<1x16x16x32xf32>
    %c0_11 = arith.constant 0 : index
    %c0_12 = arith.constant 0 : index
    %c0_13 = arith.constant 0 : index
    %c0_14 = arith.constant 0 : index
    %24 = vector.load %arg4[%c0_11, %c0_12, %c0_13, %c0_14] : memref<1x16x16x32xf32, #tpu.memory_space<vmem>>, vector<1x16x16x32xf32>
    tpu.vector_store %arg4[%c0_11, %c0_12, %c0_13, %c0_14], %23 {strides = array<i32>} : memref<1x16x16x32xf32, #tpu.memory_space<vmem>>, vector<1x16x16x32xf32>,
    return
  }
  func.func @transform_0(%arg0: i32) -> (i32, i32, i32, i32) {
    %c0_i32 = arith.constant 0 : i32
    %c0_i32_0 = arith.constant 0 : i32
    %c0_i32_1 = arith.constant 0 : i32
    %c0_i32_2 = arith.constant 0 : i32
    return %arg0, %c0_i32, %c0_i32_0, %c0_i32_1 : i32, i32, i32, i32
  }
  func.func @transform_1(%arg0: i32) -> (i32, i32) {
    %c0_i32 = arith.constant 0 : i32
    %c0_i32_0 = arith.constant 0 : i32
    %c0_i32_1 = arith.constant 0 : i32
    return %c0_i32, %c0_i32_0 : i32, i32
  }
  func.func @transform_2(%arg0: i32) -> (i32, i32) {
    %c0_i32 = arith.constant 0 : i32
    %c0_i32_0 = arith.constant 0 : i32
    %c0_i32_1 = arith.constant 0 : i32
    return %c0_i32, %c0_i32_0 : i32, i32
  }
  func.func @transform_3(%arg0: i32) -> (i32, i32, i32, i32) {
    %c0_i32 = arith.constant 0 : i32
    %c0_i32_0 = arith.constant 0 : i32
    %c0_i32_1 = arith.constant 0 : i32
    %c0_i32_2 = arith.constant 0 : i32
    return %arg0, %c0_i32, %c0_i32_0, %c0_i32_1 : i32, i32, i32, i32
  }
}

</mosaic_0001>

<bundles_post_ra>
// kernel: tpu_custom_call.1
= control target key start
LH: loop header
LB: loop body
LE: loop exit
PB: predicated region body
PF: predicated region fallthrough
CT: control target
= control target key end

     0   :  { %8 = vsyncpa [#allocation3], 0  ;;  %s1220_s0 = inlined_call_operand.hbm [shape: f32[2,16,16,32], index: 0, kind: input, shape index: {}]   ;;  %s1221_s1 = inlined_call_operand.vmem [shape: f32[1,32], index: 1, kind: input, shape index: {}]   ;;  %s1222_s2 = inlined_call_operand.vmem [shape: f32[1,32], index: 2, kind: input, shape index: {}]   ;;  %s1223_s3 = inlined_call_operand.hbm [shape: f32[2,16,16,32], index: 3, kind: output, shape index: {}]  }
   0x1   :  { %10 = vsyncpa [#allocation3 + $0x1], 0 }
   0x2   :  { %11 = vsyncpa [#allocation4], 0 }
   0x3   :  { %13 = vsyncpa [#allocation4 + $0x1], 0  ;;  %s728_s12 = smov 0   ;;  %s730_s13 = smov 0  }
   0x4   :  { %s732_s14 = smov 0   ;;  %s734_s15 = smov 0  }
   0x5 LB: > { %s749_s16 = sadd.s32 4294967295, %s700_s15   ;;  %s537_s17 = sadd.s32 4294967294, %s700_s15   ;;  %s700_s15 = sphi %s734_s15, %s1238_s15   ;;  %s696_s14 = sphi %s732_s14, %s1237_s14   ;;  %s692_s13 = sphi %s730_s13, %s1236_s13   ;;  %s688_s12 = sphi %s728_s12, %s1235_s12  }
   0x6   : > { %s753_s18 = sadd.s32 1, %s700_s15   ;;  %s26_s19 = sadd.s32 1, %s696_s14 }
   0x7   : > { %s23_s20 = ssub.s32 %s700_s15, %s753_s18  ;;  %p33_p0 = scmp.ne.s32.totalorder %s696_s14, %s692_s13 }
   0x8   : > { %p24_p1 = scmp.eq.s32.totalorder %s23_s20, 0  ;;  %p34_p2 = scmp.eq.s32.totalorder %s700_s15, 0 }
   0x9   : > { %p39_p3 = scmp.ne.s32.totalorder %s692_s13, %s688_s12  ;;  %p40_p4 = scmp.eq.s32.totalorder %s749_s16, 0 }
   0xa   : > { %s765_s21 = scalar_select %p24_p1, %s696_s14, %s26_s19  }
   0xb   : > { %p767_p5 = por %p34_p2, %p33_p0  ;;  %p771_p6 = por %p40_p4, %p39_p3 }
   0xc   : > { %p105_p7 = scmp.eq.s32.totalorder %s749_s16, 1  ;;  %p111_p8 = scmp.eq.s32.totalorder %s537_s17, 1 }
   0xd   : > { %s1227_s23 = scalar_select %p771_p6, 1, 0 }
   0xe   : > { %p566_p10 = scmp.lt.s32.totalorder %s700_s15, 2  ;;  %p778_p11 = por %p105_p7, %p33_p0 }
   0xf   : > { %p782_p12 = por %p111_p8, %p39_p3  ;;  %s137_s26 = sand.u32 1, %s696_s14  }
  0x10   : > { %s1228_s24 = scalar_select %p778_p11, 1, 0 }
  0x11   : > { %s1229_s25 = scalar_select %p782_p12, 1, 0 }
  0x12   : > { %s552_s27 = sshll.u32 %s700_s15, 12  ;;  %s540_s28 = sshll.u32 %s137_s26, 8 }
  0x13   : > { %s791_s4 = scalar_lea.hbm %s1220_s0, %s552_s27  ;;  %s141_s5 = scalar_lea.vmem [#allocation2], %s540_s28 }
  0x14   : > { %s148_s6 = sshll.u32 %s141_s5, 4  ;;  %p795_p13 = pnand %p566_p10, %p767_p5  ;;  %s799_s6 = int_to_ptr.vmem [resolvable:$true] %s148_s6 }
  0x15   : > { %s801_s8 = scalar_lea.sflag [#allocation3], %s137_s26  ;;  %s608_s9 = scalar_lea.hbm %s791_s4, 4096 }
  0x16   : > { %p609_p0 = scmp.ne.s32.totalorder %s791_s4, %s608_s9  ;;  %p610_p1 = pneg %p795_p13 }
  0x17   : > { %s613_s17 = scalar_lea.hbm %s1220_s0, 8192  ;;  %p614_p4 = scmp.lt.s32.totalorder %s791_s4, %s1220_s0 }
  0x18   : > { %p611_p2 = pnand %p610_p1, %p609_p0  ;;  %p615_p5 = scmp.lt.s32.totalorder %s613_s17, %s608_s9 }
  0x1a   : > { %p612_p3 = pneg %p611_p2  ;;  %p616_p7 = por %p615_p5, %p614_p4 }
  0x1c   : > { %p617_p8 = pnand %p616_p7, %p612_p3 }
  0x1e   : > { %620 = shalt.err (!%p617_p8)
}
  0x1f   : > { %s621_s22 = scalar_lea.vmem %s799_s6, 4096  ;;  %s702_s26 = smov [#allocation2]  }
  0x20   : > { %p622_p10 = scmp.ne.s32.totalorder %s799_s6, %s621_s22  ;;  %s626_s27 = sshll.u32 %s702_s26, 4  ;;  %s627_s27 = int_to_ptr.vmem [resolvable:$false] %s626_s27 }
  0x21   : > { %s628_s28 = scalar_lea.vmem %s627_s27, 8192  ;;  %p629_p2 = scmp.lt.s32.totalorder %s799_s6, %s627_s27 }
  0x22   : > { %p624_p9 = pnand %p622_p10, %p610_p1  ;;  %p630_p12 = scmp.lt.s32.totalorder %s628_s28, %s621_s22 }
  0x24   : > { %p625_p0 = pneg %p624_p9  ;;  %p631_p11 = por %p630_p12, %p629_p2 }
  0x26   : > { %p632_p6 = pnand %p631_p11, %p625_p0 }
  0x28   : > { %635 = shalt.err (!%p632_p6)
}
  0x29   : > { %s703_s29 = smov 128   ;;  %s704_s30 = smov 8  }
  0x2a   : > { %561 = dma.hbm_to_vmem [thread:$0]  (!%p795_p13), %s791_s4, 4096, %s799_s6, %s801_s8, %s703_s29, %s703_s29, %s704_s30  }
  0x2b   : > { %p543_p9 = scmp.ge.s32.totalorder %s700_s15, 1  ;;  %p156_p1 = scmp.lt.s32.totalorder %s700_s15, 3 }
  0x2d   : > { %p157_p3 = pnand %p543_p9, %p156_p1 }
  0x2e   : > { %s825_s5 = sand.u32 (!%p157_p3), 1, %s692_s13   ;;  %p1231_p6 = scmp.ne.s32.totalorder (!%p157_p3), %s1227_s23, 0 }
  0x2f   : > { %160 = sbr.rel (%p157_p3) target bundleno = 354 (0x162), region = 32  ;;  %s544_s9 = sshll.u32 (!%p157_p3), %s825_s5, 8 }
  0x30   : > { %s163_s10 = scalar_lea.sflag (!%p157_p3), [#allocation3], %s825_s5  ;;  %s831_s11 = scalar_lea.vmem (!%p157_p3), [#allocation2], %s544_s9 }
  0x34   : > { %679 = dma.done.wait (%p1231_p6), %s163_s10, 4096  }
  0x35   : > { %681 = vsyncadd (%p1231_p6), %s163_s10, 4294963200  ;;  %v838_v0 = vld [vmem:[%s831_s11] sm:$0xff]  ;;  %v841_v1 = vld [vmem:[%s831_s11 + $0x8] sm:$0xff]  ;;  %vm253_vm0 = vcmask 261120   ;;  %s1084_s8 = scalar_lea.vmem [#allocation5], %s544_s9  ;;  %s553_s17 = sshll.u32 %s749_s16, 12 }
  0x36   : > { %v844_v2 = vld [vmem:[%s831_s11 + $0x10] sm:$0xff]  ;;  %v847_v3 = vld [vmem:[%s831_s11 + $0x18] sm:$0xff]  ;;  %v221_v4 = vmul.f32 %v838_v0, %v838_v0  ;;  %v222_v5 = vmul.f32 %v841_v1, %v841_v1  ;;  %v856_v7 = vld [vmem:[%s831_s11 + $0x20] sm:$0xff]  ;;  %s464_s19 = sshll.u32 %s1084_s8, 4  ;;  %s1147_s22 = scalar_lea.hbm %s1223_s3, %s553_s17  ;;  %s1149_s19 = int_to_ptr.vmem [resolvable:$true] %s464_s19 }
  0x37   : > { %v223_v6 = vmul.f32 %v844_v2, %v844_v2  ;;  %v860_v9 = vld [vmem:[%s831_s11 + $0x28] sm:$0xff]  ;;  %v224_v10 = vmul.f32 %v847_v3, %v847_v3  ;;  %v866_v12 = vld [vmem:[%s831_s11 + $0x30] sm:$0xff]  ;;  %v225_v14 = vmul.f32 %v856_v7, %v856_v7  ;;  %v872_v16 = vld [vmem:[%s831_s11 + $0x38] sm:$0xff]  ;;  %s451_s26 = scalar_lea.sflag [#allocation4], %s825_s5  ;;  %s636_s27 = scalar_lea.vmem %s1149_s19, 4096 }
  0x38   : > { %v254_v8 = vsel %vm253_vm0, %v221_v4, 0.0  ;;  %v255_v11 = vsel %vm253_vm0, %v222_v5, 0.0  ;;  %v226_v17 = vmul.f32 %v860_v9, %v860_v9  ;;  %v227_v19 = vmul.f32 %v866_v12, %v866_v12  ;;  %v880_v21 = vld [vmem:[%s831_s11 + $0x40] sm:$0xff]  ;;  %v886_v25 = vld [vmem:[%s831_s11 + $0x48] sm:$0xff]  ;;  %v893_v30 = vld [vmem:[%s831_s11 + $0x50] sm:$0xff]  ;;  %p637_p11 = scmp.ne.s32.totalorder %s1149_s19, %s636_s27  ;;  %p1232_p12 = scmp.ne.s32.totalorder %s1228_s24, 0 }
  0x39   : > { %v256_v13 = vadd.f32 %v255_v11, %v254_v8  ;;  %v257_v15 = vsel %vm253_vm0, %v223_v6, 0.0  ;;  %v259_v20 = vsel %vm253_vm0, %v224_v10, 0.0  ;;  %v228_v23 = vmul.f32 %v872_v16, %v872_v16  ;;  %v899_v34 = vld [vmem:[%s831_s11 + $0x58] sm:$0xff]  ;;  %v905_v38 = vld [vmem:[%s831_s11 + $0x60] sm:$0xff]  ;;  %v911_v42 = vld [vmem:[%s831_s11 + $0x68] sm:$0xff]  ;;  %s705_s28 = smov [#allocation5]  }
  0x3a   : > { %v261_v24 = vsel %vm253_vm0, %v225_v14, 0.0  ;;  %v263_v27 = vsel %vm253_vm0, %v226_v17, 0.0  ;;  %v229_v28 = vmul.f32 %v880_v21, %v880_v21  ;;  %v265_v29 = vsel %vm253_vm0, %v227_v19, 0.0  ;;  %v917_v46 = vld [vmem:[%s831_s11 + $0x70] sm:$0xff]  ;;  %v923_v50 = vld [vmem:[%s831_s11 + $0x78] sm:$0xff]  ;;  %v929_v54 = vld [vmem:[%s831_s11 + $0x80] sm:$0xff]  ;;  %p638_p13 = pnand %p637_p11, %p1232_p12 }
  0x3b   : > { %v258_v18 = vadd.f32 %v257_v15, %v256_v13  ;;  %v230_v32 = vmul.f32 %v886_v25, %v886_v25  ;;  %v267_v33 = vsel %vm253_vm0, %v228_v23, 0.0  ;;  %v231_v36 = vmul.f32 %v893_v30, %v893_v30  ;;  %v935_v58 = vld [vmem:[%s831_s11 + $0x88] sm:$0xff]  ;;  %v941_v62 = vld [vmem:[%s831_s11 + $0x90] sm:$0xff]  ;;  %v947_v6 = vld [vmem:[%s831_s11 + $0x98] sm:$0xff]  ;;  %s640_s29 = sshll.u32 %s705_s28, 4  ;;  %s641_s29 = int_to_ptr.vmem [resolvable:$false] %s640_s29 }
  0x3c   : > { %v269_v37 = vsel %vm253_vm0, %v229_v28, 0.0  ;;  %v232_v40 = vmul.f32 %v899_v34, %v899_v34  ;;  %v233_v44 = vmul.f32 %v905_v38, %v905_v38  ;;  %v234_v48 = vmul.f32 %v911_v42, %v911_v42  ;;  %v953_v13 = vld [vmem:[%s831_s11 + $0xa0] sm:$0xff]  ;;  %v965_v23 = vld [vmem:[%s831_s11 + $0xb0] sm:$0xff]  ;;  %v971_v28 = vld [vmem:[%s831_s11 + $0xb8] sm:$0xff]  ;;  %p639_p4 = pneg %p638_p13  ;;  %s642_s30 = scalar_lea.vmem %s641_s29, 8192 }
  0x3d   : > { %v260_v22 = vadd.f32 %v259_v20, %v258_v18  ;;  %v271_v41 = vsel %vm253_vm0, %v230_v32, 0.0  ;;  %v273_v45 = vsel %vm253_vm0, %v231_v36, 0.0  ;;  %v235_v52 = vmul.f32 %v917_v46, %v917_v46  ;;  %v959_v18 = vld [vmem:[%s831_s11 + $0xa8] sm:$0xff]  ;;  %p643_p5 = scmp.lt.s32.totalorder %s1149_s19, %s641_s29  ;;  %p644_p7 = scmp.lt.s32.totalorder %s642_s30, %s636_s27 }
  0x3e   : > { %v275_v49 = vsel %vm253_vm0, %v232_v40, 0.0  ;;  %v277_v53 = vsel %vm253_vm0, %v233_v44, 0.0  ;;  %v236_v56 = vmul.f32 %v923_v50, %v923_v50  ;;  %v279_v57 = vsel %vm253_vm0, %v234_v48, 0.0  ;;  %v989_v44 = vld [vmem:[%s831_s11 + $0xd0] sm:$0xff] }
  0x3f   : > { %v262_v26 = vadd.f32 %v261_v24, %v260_v22  ;;  %v237_v60 = vmul.f32 %v929_v54, %v929_v54  ;;  %v281_v61 = vsel %vm253_vm0, %v235_v52, 0.0  ;;  %v238_v4 = vmul.f32 %v935_v58, %v935_v58  ;;  %p645_p8 = por %p644_p7, %p643_p5 }
  0x40   : > { %v283_v5 = vsel %vm253_vm0, %v236_v56, 0.0  ;;  %v239_v10 = vmul.f32 %v941_v62, %v941_v62  ;;  %v240_v15 = vmul.f32 %v947_v6, %v947_v6  ;;  %v241_v20 = vmul.f32 %v953_v13, %v953_v13 }
  0x41   : > { %v264_v31 = vadd.f32 %v263_v27, %v262_v26  ;;  %v285_v11 = vsel %vm253_vm0, %v237_v60, 0.0  ;;  %v287_v17 = vsel %vm253_vm0, %v238_v4, 0.0  ;;  %v242_v26 = vmul.f32 %v959_v18, %v959_v18  ;;  %v1007_v60 = vld [vmem:[%s831_s11 + $0xe8] sm:$0xff]  ;;  %p646_p10 = pnand %p645_p8, %p639_p4 }
  0x42   : > { %v289_v22 = vsel %vm253_vm0, %v239_v10, 0.0  ;;  %v291_v27 = vsel %vm253_vm0, %v240_v15, 0.0  ;;  %v293_v32 = vsel %vm253_vm0, %v241_v20, 0.0  ;;  %v244_v36 = vmul.f32 %v971_v28, %v971_v28 }
  0x43   : > { %v266_v35 = vadd.f32 %v265_v29, %v264_v31  ;;  %v243_v31 = vmul.f32 %v965_v23, %v965_v23  ;;  %v247_v52 = vmul.f32 %v989_v44, %v989_v44  ;;  %v250_v10 = vmul.f32 %v1007_v60, %v1007_v60 }
  0x44   : > { %v299_v48 = vsel %vm253_vm0, %v244_v36, 0.0 }
  0x45   : > { %v268_v39 = vadd.f32 %v267_v33, %v266_v35  ;;  %v977_v33 = vld [vmem:[%s831_s11 + $0xc0] sm:$0xff]  ;;  %v305_v4 = vsel %vm253_vm0, %v247_v52, 0.0 }
  0x47   : > { %v270_v43 = vadd.f32 %v269_v37, %v268_v39  ;;  %v295_v37 = vsel %vm253_vm0, %v242_v26, 0.0  ;;  %v983_v39 = vld [vmem:[%s831_s11 + $0xc8] sm:$0xff] }
  0x49   : > { %v272_v47 = vadd.f32 %v271_v41, %v270_v43  ;;  %v245_v41 = vmul.f32 %v977_v33, %v977_v33  ;;  %v297_v43 = vsel %vm253_vm0, %v243_v31, 0.0 }
  0x4b   : > { %v274_v51 = vadd.f32 %v273_v45, %v272_v47  ;;  %v246_v47 = vmul.f32 %v983_v39, %v983_v39 }
  0x4d   : > { %v276_v55 = vadd.f32 %v275_v49, %v274_v51  ;;  %v995_v49 = vld [vmem:[%s831_s11 + $0xd8] sm:$0xff] }
  0x4f   : > { %v278_v59 = vadd.f32 %v277_v53, %v276_v55  ;;  %v301_v53 = vsel %vm253_vm0, %v245_v41, 0.0  ;;  %v1001_v55 = vld [vmem:[%s831_s11 + $0xe0] sm:$0xff] }
  0x51   : > { %v280_v63 = vadd.f32 %v279_v57, %v278_v59  ;;  %v248_v57 = vmul.f32 %v995_v49, %v995_v49  ;;  %v303_v59 = vsel %vm253_vm0, %v246_v47, 0.0 }
  0x53   : > { %v282_v8 = vadd.f32 %v281_v61, %v280_v63  ;;  %v249_v63 = vmul.f32 %v1001_v55, %v1001_v55 }
  0x55   : > { %v284_v14 = vadd.f32 %v283_v5, %v282_v8  ;;  %v1013_v5 = vld [vmem:[%s831_s11 + $0xf0] sm:$0xff] }
  0x57   : > { %v286_v19 = vadd.f32 %v285_v11, %v284_v14  ;;  %v307_v11 = vsel %vm253_vm0, %v248_v57, 0.0  ;;  %v1019_v14 = vld [vmem:[%s831_s11 + $0xf8] sm:$0xff] }
  0x59   : > { %v288_v24 = vadd.f32 %v287_v17, %v286_v19  ;;  %v251_v17 = vmul.f32 %v1013_v5, %v1013_v5  ;;  %v309_v19 = vsel %vm253_vm0, %v249_v63, 0.0  ;;  %v343_v63 = vlaneseq }
  0x5b   : > { %v290_v29 = vadd.f32 %v289_v22, %v288_v24  ;;  %v252_v22 = vmul.f32 %v1019_v14, %v1019_v14  ;;  %v311_v24 = vsel %vm253_vm0, %v250_v10, 0.0  ;;  %v338_v10 = vld [vmem:[%s1221_s1] sm:$0x1] }
  0x5d   : > { %v292_v35 = vadd.f32 %v291_v27, %v290_v29  ;;  %v313_v27 = vsel %vm253_vm0, %v251_v17, 0.0  ;;  %v315_v31 = vsel %vm253_vm0, %v252_v22, 0.0 }
  0x5f   : > { %v294_v40 = vadd.f32 %v293_v32, %v292_v35 }
  0x61   : > { %v296_v45 = vadd.f32 %v295_v37, %v294_v40 }
  0x63   : > { %v298_v51 = vadd.f32 %v297_v43, %v296_v45 }
  0x65   : > { %v300_v56 = vadd.f32 %v299_v48, %v298_v51 }
  0x67   : > { %v302_v61 = vadd.f32 %v301_v53, %v300_v56 }
  0x69   : > { %v304_v8 = vadd.f32 %v303_v59, %v302_v61 }
  0x6b   : > { %v306_v15 = vadd.f32 %v305_v4, %v304_v8  ;;  %v344_v4 = vshrl.u32 %v343_v63, 7 }
  0x6d   : > { %v308_v20 = vadd.f32 %v307_v11, %v306_v15  ;;  %v345_v17 = vsub.s32 0, %v344_v4 }
  0x6f   : > { %v310_v26 = vadd.f32 %v309_v19, %v308_v20 }
  0x71   : > { %v312_v29 = vadd.f32 %v311_v24, %v310_v26 }
  0x73   : > { %v314_v32 = vadd.f32 %v313_v27, %v312_v29 }
  0x75   : > { %v316_v35 = vadd.f32 %v315_v31, %v314_v32 }
  0x77   : > { %v317_v36 = vrot.slane %v316_v35, 4 }
  0x79   : > { %v318_v37 = vadd.f32 %v317_v36, %v316_v35 }
  0x7b   : > { %v319_v40 = vrot.slane %v318_v37, 2 }
  0x7d   : > { %v320_v41 = vadd.f32 %v319_v40, %v318_v37 }
  0x7f   : > { %v321_v43 = vrot.slane %v320_v41, 1 }
  0x81   : > { %v322_v45 = vadd.f32 %v321_v43, %v320_v41 }
  0x83   : > { %604 = vrsqrt.f32 %v322_v45  ;;  %vm325_vm1 = vcmp.eq.f32.partialorder %v322_v45, inf  ;;  %v328_v48 = vand.u32 2147483648, %v322_v45  ;;  %vm327_vm2 = vcmp.eq.f32.partialorder %v322_v45, 0.0 }
  0x90   : > { %v605_v47 = vpop.eup %604 }
  0x91   : > { %v324_v51 = vmul.f32 %v605_v47, %v322_v45 }
  0x93   : > { %v326_v52 = vsel %vm325_vm1, %v322_v45, %v324_v51 }
  0x94   : > { %v329_v53 = vsel %vm327_vm2, %v328_v48, %v326_v52 }
  0x95   : > { %v330_v56 = vsel %vm253_vm0, %v329_v53, 0.0 }
  0x96   : > { %331 = vadd.xlane.f32.xlu0 %v330_v56 }
 0x11f   : > { %v332_v57 = vpop.xlane.xlu0 %331 }
 0x120   : > { %v334_v59 = vmul.f32 0.03125, %v332_v57 }
 0x122   : > { %v335_v61 = vadd.f32 1e-06, %v334_v59 }
 0x124   : > { %606 = vrcp.f32 %v335_v61 }
 0x131   : > { %v607_v8 = vpop.eup %606 }
 0x132   : > { %v337_v11 = vmul.f32 %v607_v8, %v329_v53 }
 0x134   : > { %v340_v15 = vmul.f32 %v338_v10, %v337_v11 }
 0x136   : > { %v341_v19 = vadd.f32 1.0, %v340_v15 }
 0x138   : > { %v346_v20 = vrot.slane %v341_v19, %v345_v17 }
 0x13a   : > { %v348_v22 = vmul.f32 %v346_v20, %v838_v0  ;;  %v349_v24 = vmul.f32 %v346_v20, %v841_v1  ;;  %v350_v26 = vmul.f32 %v346_v20, %v844_v2  ;;  %v351_v27 = vmul.f32 %v346_v20, %v847_v3 }
 0x13b   : > { %v352_v29 = vmul.f32 %v346_v20, %v856_v7  ;;  %v353_v31 = vmul.f32 %v346_v20, %v860_v9  ;;  %v354_v32 = vmul.f32 %v346_v20, %v866_v12  ;;  %v355_v35 = vmul.f32 %v346_v20, %v872_v16 }
 0x13c   : > { %v356_v36 = vmul.f32 %v346_v20, %v880_v21  ;;  %v357_v37 = vmul.f32 %v346_v20, %v886_v25  ;;  %v358_v0 = vmul.f32 %v346_v20, %v893_v30  ;;  %v359_v1 = vmul.f32 %v346_v20, %v899_v34  ;;  %v1056_v30 = vld [vmem:[%s1222_s2] ss:$0 sm:$0xff] }
 0x13d   : > { %v360_v2 = vmul.f32 %v346_v20, %v905_v38  ;;  %v361_v3 = vmul.f32 %v346_v20, %v911_v42  ;;  %v362_v7 = vmul.f32 %v346_v20, %v917_v46  ;;  %v363_v9 = vmul.f32 %v346_v20, %v923_v50 }
 0x13e   : > { %v364_v12 = vmul.f32 %v346_v20, %v929_v54  ;;  %v365_v16 = vmul.f32 %v346_v20, %v935_v58  ;;  %v366_v21 = vmul.f32 %v346_v20, %v941_v62  ;;  %v367_v25 = vmul.f32 %v346_v20, %v947_v6 }
 0x13f   : > { %v368_v34 = vmul.f32 %v346_v20, %v953_v13  ;;  %v369_v38 = vmul.f32 %v346_v20, %v959_v18  ;;  %v370_v42 = vmul.f32 %v346_v20, %v965_v23  ;;  %v371_v46 = vmul.f32 %v346_v20, %v971_v28 }
 0x140   : > { %v372_v50 = vmul.f32 %v346_v20, %v977_v33  ;;  %v373_v54 = vmul.f32 %v346_v20, %v983_v39  ;;  %v374_v58 = vmul.f32 %v346_v20, %v989_v44  ;;  %v375_v62 = vmul.f32 %v346_v20, %v995_v49 }
 0x141   : > { %v376_v6 = vmul.f32 %v346_v20, %v1001_v55  ;;  %v377_v40 = vmul.f32 %v346_v20, %v1007_v60  ;;  %v378_v13 = vmul.f32 %v346_v20, %v1013_v5  ;;  %v379_v18 = vmul.f32 %v346_v20, %v1019_v14 }
 0x142   : > { %v386_v23 = vadd.f32 %v1056_v30, %v348_v22  ;;  %v387_v28 = vadd.f32 %v1056_v30, %v349_v24  ;;  %v388_v33 = vadd.f32 %v1056_v30, %v350_v26  ;;  %v389_v39 = vadd.f32 %v1056_v30, %v351_v27 }
 0x143   : > { %v390_v44 = vadd.f32 %v1056_v30, %v352_v29  ;;  %v391_v49 = vadd.f32 %v1056_v30, %v353_v31  ;;  %v392_v55 = vadd.f32 %v1056_v30, %v354_v32  ;;  %v393_v60 = vadd.f32 %v1056_v30, %v355_v35 }
 0x144   : > { %v394_v5 = vadd.f32 %v1056_v30, %v356_v36  ;;  %v395_v14 = vadd.f32 %v1056_v30, %v357_v37  ;;  %v396_v41 = vadd.f32 %v1056_v30, %v358_v0  ;;  %v397_v43 = vadd.f32 %v1056_v30, %v359_v1  ;;  %418 = vst.msk [vmem:[%s1084_s8] sm:$0xff] %vm253_vm0, %v386_v23 }
 0x145   : > { %419 = vst.msk [vmem:[%s1084_s8 + $0x8] sm:$0xff] %vm253_vm0, %v387_v28  ;;  %420 = vst.msk [vmem:[%s1084_s8 + $0x10] sm:$0xff] %vm253_vm0, %v388_v33  ;;  %v398_v45 = vadd.f32 %v1056_v30, %v360_v2  ;;  %v399_v47 = vadd.f32 %v1056_v30, %v361_v3  ;;  %v400_v48 = vadd.f32 %v1056_v30, %v362_v7 }
 0x146   : > { %421 = vst.msk [vmem:[%s1084_s8 + $0x18] sm:$0xff] %vm253_vm0, %v389_v39  ;;  %v401_v51 = vadd.f32 %v1056_v30, %v363_v9  ;;  %422 = vst.msk [vmem:[%s1084_s8 + $0x20] sm:$0xff] %vm253_vm0, %v390_v44  ;;  %v402_v52 = vadd.f32 %v1056_v30, %v364_v12  ;;  %v403_v53 = vadd.f32 %v1056_v30, %v365_v16 }
 0x147   : > { %423 = vst.msk [vmem:[%s1084_s8 + $0x28] sm:$0xff] %vm253_vm0, %v391_v49  ;;  %424 = vst.msk [vmem:[%s1084_s8 + $0x30] sm:$0xff] %vm253_vm0, %v392_v55  ;;  %v404_v56 = vadd.f32 %v1056_v30, %v366_v21  ;;  %v405_v57 = vadd.f32 %v1056_v30, %v367_v25  ;;  %v406_v59 = vadd.f32 %v1056_v30, %v368_v34 }
 0x148   : > { %425 = vst.msk [vmem:[%s1084_s8 + $0x38] sm:$0xff] %vm253_vm0, %v393_v60  ;;  %426 = vst.msk [vmem:[%s1084_s8 + $0x40] sm:$0xff] %vm253_vm0, %v394_v5  ;;  %v407_v61 = vadd.f32 %v1056_v30, %v369_v38  ;;  %v408_v63 = vadd.f32 %v1056_v30, %v370_v42  ;;  %v409_v4 = vadd.f32 %v1056_v30, %v371_v46 }
 0x149   : > { %427 = vst.msk [vmem:[%s1084_s8 + $0x48] sm:$0xff] %vm253_vm0, %v395_v14  ;;  %428 = vst.msk [vmem:[%s1084_s8 + $0x50] sm:$0xff] %vm253_vm0, %v396_v41  ;;  %v410_v8 = vadd.f32 %v1056_v30, %v372_v50  ;;  %v411_v10 = vadd.f32 %v1056_v30, %v373_v54  ;;  %v412_v11 = vadd.f32 %v1056_v30, %v374_v58 }
 0x14a   : > { %429 = vst.msk [vmem:[%s1084_s8 + $0x58] sm:$0xff] %vm253_vm0, %v397_v43  ;;  %430 = vst.msk [vmem:[%s1084_s8 + $0x60] sm:$0xff] %vm253_vm0, %v398_v45  ;;  %v413_v15 = vadd.f32 %v1056_v30, %v375_v62  ;;  %v414_v17 = vadd.f32 %v1056_v30, %v376_v6  ;;  %v415_v19 = vadd.f32 %v1056_v30, %v377_v40 }
 0x14b   : > { %431 = vst.msk [vmem:[%s1084_s8 + $0x68] sm:$0xff] %vm253_vm0, %v399_v47  ;;  %432 = vst.msk [vmem:[%s1084_s8 + $0x70] sm:$0xff] %vm253_vm0, %v400_v48  ;;  %v416_v20 = vadd.f32 %v1056_v30, %v378_v13  ;;  %v417_v22 = vadd.f32 %v1056_v30, %v379_v18 }
 0x14c   : > { %433 = vst.msk [vmem:[%s1084_s8 + $0x78] sm:$0xff] %vm253_vm0, %v401_v51  ;;  %434 = vst.msk [vmem:[%s1084_s8 + $0x80] sm:$0xff] %vm253_vm0, %v402_v52 }
 0x14d   : > { %435 = vst.msk [vmem:[%s1084_s8 + $0x88] sm:$0xff] %vm253_vm0, %v403_v53  ;;  %436 = vst.msk [vmem:[%s1084_s8 + $0x90] sm:$0xff] %vm253_vm0, %v404_v56 }
 0x14e   : > { %437 = vst.msk [vmem:[%s1084_s8 + $0x98] sm:$0xff] %vm253_vm0, %v405_v57  ;;  %438 = vst.msk [vmem:[%s1084_s8 + $0xa0] sm:$0xff] %vm253_vm0, %v406_v59 }
 0x14f   : > { %439 = vst.msk [vmem:[%s1084_s8 + $0xa8] sm:$0xff] %vm253_vm0, %v407_v61  ;;  %440 = vst.msk [vmem:[%s1084_s8 + $0xb0] sm:$0xff] %vm253_vm0, %v408_v63 }
 0x150   : > { %441 = vst.msk [vmem:[%s1084_s8 + $0xb8] sm:$0xff] %vm253_vm0, %v409_v4  ;;  %442 = vst.msk [vmem:[%s1084_s8 + $0xc0] sm:$0xff] %vm253_vm0, %v410_v8 }
 0x151   : > { %443 = vst.msk [vmem:[%s1084_s8 + $0xc8] sm:$0xff] %vm253_vm0, %v411_v10  ;;  %444 = vst.msk [vmem:[%s1084_s8 + $0xd0] sm:$0xff] %vm253_vm0, %v412_v11 }
 0x152   : > { %445 = vst.msk [vmem:[%s1084_s8 + $0xd8] sm:$0xff] %vm253_vm0, %v413_v15  ;;  %446 = vst.msk [vmem:[%s1084_s8 + $0xe0] sm:$0xff] %vm253_vm0, %v414_v17 }
 0x153   : > { %447 = vst.msk [vmem:[%s1084_s8 + $0xe8] sm:$0xff] %vm253_vm0, %v415_v19  ;;  %448 = vst.msk [vmem:[%s1084_s8 + $0xf0] sm:$0xff] %vm253_vm0, %v416_v20 }
 0x154   : > { %449 = vst.msk [vmem:[%s1084_s8 + $0xf8] sm:$0xff] %vm253_vm0, %v417_v22 }
 0x155   : > { %649 = shalt.err (!%p646_p10)
}
 0x156   : > { %s650_s9 = scalar_lea.hbm %s1147_s22, 4096  ;;  %s654_s23 = scalar_lea.hbm %s1223_s3, 8192 }
 0x157   : > { %p651_p0 = scmp.ne.s32.totalorder %s1147_s22, %s650_s9  ;;  %p655_p1 = scmp.lt.s32.totalorder %s1147_s22, %s1223_s3 }
 0x158   : > { %p656_p3 = scmp.lt.s32.totalorder %s654_s23, %s650_s9 }
 0x159   : > { %p652_p2 = pnand %p651_p0, %p1232_p12 }
 0x15a   : > { %p657_p6 = por %p656_p3, %p655_p1 }
 0x15b   : > { %p653_p9 = pneg %p652_p2 }
 0x15d   : > { %p658_p11 = pnand %p657_p6, %p653_p9 }
 0x15f   : > { %661 = shalt.err (!%p658_p11)
}
 0x160   : > { %s706_s7 = smov 128   ;;  %s707_s8 = smov 8  }
 0x161   : > { %556 = dma.vmem_to_hbm [thread:$0]  (%p1232_p12), %s1149_s19, 4096, %s1147_s22, %s451_s26, %s706_s7, %s706_s7, %s707_s8  }
 0x162 PF: > { %s479_s17 = sand.u32 1, %s688_s12   ;;  %p1233_p13 = scmp.ne.s32.totalorder %s1229_s25, 0 }
 0x163   : > { %p1234_p4 = scmp.ge.s32.totalorder %s700_s15, 2  ;;  %s480_s16 = scalar_lea.sflag [#allocation4], %s479_s17 }
 0x165   : > { %p563_p5 = pnand %p1234_p4, %p1233_p13 }
 0x167   : > { %p564_p7 = pneg %p563_p5 }
 0x169   : > { %683 = dma.done.wait (%p564_p7), %s480_s16, 4096  }
 0x16a   : > { %685 = vsyncadd (%p564_p7), %s480_s16, 4294963200  ;;  %p16_p8 = scmp.ge.s32.totalorder %s753_s18, 4   ;;  %s1235_s12 = smov %s692_s13 }
 0x16b   : > { %s1236_s13 = smov %s696_s14  ;;  %s1237_s14 = smov %s765_s21 }
 0x16c   : > { %s1238_s15 = smov %s753_s18  ;;  %18 = sbr.rel (!%p16_p8) target bundleno = 5 (0x5), region = 77 }
 0x171   :  { %485 = vsyncpa [#allocation3], 1 }
 0x172   :  { %487 = vsyncpa [#allocation3 + $0x1], 1 }
 0x173   :  { %488 = vsyncpa [#allocation4], 1 }
 0x174   :  { %490 = vsyncpa [#allocation4 + $0x1], 1 }

</bundles_post_ra>
